<compile_context>
chip_gen: v5e
topology: v5e:2x2
jax: 0.10.0
libtpu: 0.0.40
codegen_flags: <defaults>
</compile_context>

<pallas_src>
import jax
import jax.numpy as jnp
from jax.experimental import pallas as pl
from jax.experimental.pallas import tpu as pltpu


# ----------------------------- Pallas kernel --------------------------------

def _cheb_gcn_kernel(x_ref, w_ref, tk_ref, b_ref, o_ref):
    # grid = (row_tiles, K); K is innermost so the output tile is resident
    # across the K-reduction.
    k = pl.program_id(1)

    @pl.when(k == 0)
    def _():
        o_ref[...] = jnp.zeros_like(o_ref)

    # support = X @ W[k]        : (N, Fin) @ (Fin, Fout_p) -> (N, Fout_p), f32 acc
    support = jnp.dot(x_ref[...], w_ref[...], preferred_element_type=jnp.float32)
    support = support.astype(tk_ref.dtype)  # back to bf16 for the MXU pass

    # o += T_k[row_tile] @ support : (tm, N) @ (N, Fout_p) -> (tm, Fout_p)
    o_ref[...] += jnp.dot(tk_ref[...], support, preferred_element_type=jnp.float32)

    @pl.when(k == pl.num_programs(1) - 1)
    def _():
        o_ref[...] += b_ref[...]


def _pick_row_tile(N, Fin, Fout_p, compute_dtype):
    """Largest row tile (multiple of 128, dividing N) that fits a conservative
    VMEM budget under the default 32 MiB scoped limit; fall back to tm = N."""
    item = jnp.dtype(compute_dtype).itemsize
    budget = 24 * 1024 * 1024
    for tm in (1024, 512, 256, 128):
        if N % tm == 0:
            need = (2 * tm * N * item          # T_k row tile (double-buffered)
                    + 2 * N * Fin * item       # X (resident; counted x2 to be safe)
                    + 2 * Fin * Fout_p * item  # W[k] (double-buffered)
                    + 2 * tm * Fout_p * 4      # f32 output tile
                    + 2 * Fout_p * 4)          # bias
            if need <= budget:
                return tm
    return N


def cheb_graph_conv(x, weight, t_k_stack, bias, *, compute_dtype=jnp.bfloat16):
    """x: [N, Fin], weight: [K, Fin, Fout], t_k_stack: [K, N, N] (T_1..T_K),
    bias: [Fout]. Returns [N, Fout] float32."""
    N, Fin = x.shape
    K, _, Fout = weight.shape

    LANES = 128
    Fout_p = ((Fout + LANES - 1) // LANES) * LANES

    # bf16 streaming operands; f32 accumulation inside the kernel.
    x_c = x.astype(compute_dtype)
    w_c = jnp.pad(weight, ((0, 0), (0, 0), (0, Fout_p - Fout))).astype(compute_dtype)
    t_c = t_k_stack.astype(compute_dtype)
    b_p = jnp.pad(bias, (0, Fout_p - Fout)).astype(jnp.float32).reshape(1, Fout_p)

    tm = _pick_row_tile(N, Fin, Fout_p, compute_dtype)
    n_row_tiles = N // tm
    grid = (n_row_tiles, K)

    itemsize = jnp.dtype(compute_dtype).itemsize
    cost = pl.CostEstimate(
        flops=int(2 * K * (n_row_tiles * N * Fin * Fout_p + N * N * Fout_p)),
        transcendentals=0,
        bytes_accessed=int(K * N * N * itemsize
                           + N * Fin * itemsize
                           + K * Fin * Fout_p * itemsize
                           + N * Fout_p * 4
                           + Fout_p * 4),
    )

    grid_spec = pltpu.PrefetchScalarGridSpec(
        num_scalar_prefetch=0,
        grid=grid,
        in_specs=[
            pl.BlockSpec((N, Fin), lambda i, k: (0, 0)),          # X, fully resident
            pl.BlockSpec((None, Fin, Fout_p), lambda i, k: (k, 0, 0)),  # W[k] (squeezed)
            pl.BlockSpec((None, tm, N), lambda i, k: (k, i, 0)),        # T_k row tile
            pl.BlockSpec((1, Fout_p), lambda i, k: (0, 0)),       # bias
        ],
        out_specs=pl.BlockSpec((tm, Fout_p), lambda i, k: (i, 0)),  # f32 accumulator tile
    )

    out_p = pl.pallas_call(
        _cheb_gcn_kernel,
        out_shape=jax.ShapeDtypeStruct((N, Fout_p), jnp.float32),
        grid_spec=grid_spec,
        compiler_params=pltpu.CompilerParams(
            # row tiles are independent (megacore on v7x); K is the reduction.
            dimension_semantics=("parallel", "arbitrary"),
        ),
        cost_estimate=cost,
    )(x_c, w_c, t_c, b_p)

    return out_p[:, :Fout]


# --------------------- Chebyshev polynomial setup (glue) --------------------
# TODO(synk): Chebyshev-basis construction (incl. jnp.linalg.eigvalsh) is
# parameter setup, done once in plain JAX — not part of the Pallas kernel.

def chebyshev_polynomials(adj, K):
    """Dense Kipf-style Chebyshev basis: returns [T_0, T_1, ..., T_K]."""
    N = adj.shape[0]
    deg = jnp.sum(adj, axis=1)
    d_inv_sqrt = jnp.where(deg > 0, 1.0 / jnp.sqrt(deg), 0.0)
    adj_norm = adj * d_inv_sqrt[:, None] * d_inv_sqrt[None, :]
    laplacian = jnp.eye(N, dtype=adj.dtype) - adj_norm
    lam_max = jnp.max(jnp.linalg.eigvalsh(laplacian))
    scaled_lap = (2.0 / lam_max) * laplacian - jnp.eye(N, dtype=adj.dtype)

    t_k = [jnp.eye(N, dtype=adj.dtype), scaled_lap]
    for _ in range(2, K + 1):
        t_k.append(2.0 * scaled_lap @ t_k[-1] - t_k[-2])
    return t_k


# --------------------------------- main --------------------------------------

if __name__ == "__main__":
    N = 8            # number of graph nodes
    in_features = 16
    out_features = 32
    K = 3

    key = jax.random.PRNGKey(0)
    k_adj, k_x, k_w, k_b = jax.random.split(key, 4)

    # Deterministic symmetric 0/1 adjacency (no self loops).
    a = (jax.random.uniform(k_adj, (N, N)) > 0.5).astype(jnp.float32)
    adj = jnp.triu(a, 1)
    adj = adj + adj.T

    # Parameters (torch.rand -> uniform[0,1)), deterministic.
    weight = jax.random.uniform(k_w, (K, in_features, out_features), dtype=jnp.float32)
    bias = jax.random.uniform(k_b, (out_features,), dtype=jnp.float32)

    # Input node features.
    x = jax.random.uniform(k_x, (N, in_features), dtype=jnp.float32)

    # Chebyshev bases; forward uses t_k[1] .. t_k[K].
    t_k = chebyshev_polynomials(adj, K)
    t_k_stack = jnp.stack(t_k[1:K + 1], axis=0)  # [K, N, N]

    out = cheb_graph_conv(x, weight, t_k_stack, bias)
    out = jax.block_until_ready(out)
    assert out.shape == (N, out_features)

    # Reference 1: exact mirror of the kernel's bf16-operand / f32-accumulate math.
    xc = x.astype(jnp.bfloat16)
    wc = weight.astype(jnp.bfloat16)
    tc = t_k_stack.astype(jnp.bfloat16)
    ref_bf16 = jnp.zeros((N, out_features), jnp.float32)
    for i in range(K):
        supp = jnp.dot(xc, wc[i], preferred_element_type=jnp.float32).astype(jnp.bfloat16)
        ref_bf16 = ref_bf16 + jnp.dot(tc[i], supp, preferred_element_type=jnp.float32)
    ref_bf16 = ref_bf16 + bias
    assert jnp.allclose(out, ref_bf16, rtol=1e-3, atol=1e-3)

    # Reference 2: full-f32 PyTorch semantics (loose tolerance for bf16 operands).
    ref_f32 = jnp.zeros((N, out_features), jnp.float32)
    for i in range(1, K + 1):
        ref_f32 = ref_f32 + t_k[i] @ (x @ weight[i - 1])
    ref_f32 = ref_f32 + bias
    assert jnp.allclose(out, ref_f32, rtol=5e-2, atol=5e-1)

    print("KERNEL_OK")
</pallas_src>

<mosaic_0001>
module attributes {stable_mosaic.version = 11 : i64} {
  func.func @_cheb_gcn_kernel(%arg0: i32, %arg1: i32, %arg2: memref<8x16xbf16, #tpu.memory_space<vmem>>, %arg3: memref<1x16x128xbf16, #tpu.memory_space<vmem>>, %arg4: memref<1x8x8xbf16, #tpu.memory_space<vmem>>, %arg5: memref<1x128xf32, #tpu.memory_space<vmem>>, %arg6: memref<8x128xf32, #tpu.memory_space<vmem>>) attributes {dimension_semantics = [#tpu.dimension_semantics<parallel>, #tpu.dimension_semantics<arbitrary>], iteration_bounds = array<i64: 1, 3>, scalar_prefetch = 0 : i64, scratch_operands = 0 : i64, tpu.core_type = #tpu.core_type<tc>, window_params = [{pipeline_mode = #tpu.pipeline_mode<synchronous>, transform_indices = @transform_0, window_bounds = array<i64: 8, 16>}, {transform_indices = @transform_1, window_bounds = array<i64: 1, 16, 128>}, {transform_indices = @transform_2, window_bounds = array<i64: 1, 8, 8>}, {pipeline_mode = #tpu.pipeline_mode<synchronous>, transform_indices = @transform_3, window_bounds = array<i64: 1, 128>}, {transform_indices = @transform_4, window_bounds = array<i64: 8, 128>}]} {
    %c0_i32 = arith.constant 0 : i32
    %0 = arith.cmpi eq, %arg1, %c0_i32 : i32
    %1 = arith.extui %0 : i1 to i32
    %c0_i32_0 = arith.constant 0 : i32
    %2 = arith.cmpi ne, %1, %c0_i32_0 : i32
    scf.if %2 {
      %cst_14 = arith.constant 0.000000e+00 : f32
      %17 = vector.broadcast %cst_14 : f32 to vector<8x128xf32>
      %c0_15 = arith.constant 0 : index
      %c0_16 = arith.constant 0 : index
      %18 = vector.load %arg6[%c0_15, %c0_16] : memref<8x128xf32, #tpu.memory_space<vmem>>, vector<8x128xf32>
      tpu.vector_store %arg6[%c0_15, %c0_16], %17 {strides = array<i32>} : memref<8x128xf32, #tpu.memory_space<vmem>>, vector<8x128xf32>,
    } else {
    }
    %c0 = arith.constant 0 : index
    %c0_1 = arith.constant 0 : index
    %3 = vector.load %arg2[%c0, %c0_1] : memref<8x16xbf16, #tpu.memory_space<vmem>>, vector<8x16xbf16>
    %c0_2 = arith.constant 0 : index
    %c0_3 = arith.constant 0 : index
    %c0_4 = arith.constant 0 : index
    %4 = vector.load %arg3[%c0_2, %c0_3, %c0_4] : memref<1x16x128xbf16, #tpu.memory_space<vmem>>, vector<1x16x128xbf16>
    %5 = vector.shape_cast %4 : vector<1x16x128xbf16> to vector<16x128xbf16>
    %cst = arith.constant dense<0.000000e+00> : vector<8x128xf32>
    %6 = tpu.matmul %3, %5, %cst {dimension_numbers = #tpu.dot_dimension_numbers<[1], [0], [0], [1], [0, 0, 1, 1], [], []>} : vector<8x16xbf16>, vector<16x128xbf16>, vector<8x128xf32> -> vector<8x128xf32>
    %7 = arith.truncf %6 : vector<8x128xf32> to vector<8x128xbf16>
    %c0_5 = arith.constant 0 : index
    %c0_6 = arith.constant 0 : index
    %8 = vector.load %arg6[%c0_5, %c0_6] : memref<8x128xf32, #tpu.memory_space<vmem>>, vector<8x128xf32>
    %c0_7 = arith.constant 0 : index
    %c0_8 = arith.constant 0 : index
    %c0_9 = arith.constant 0 : index
    %9 = vector.load %arg4[%c0_7, %c0_8, %c0_9] : memref<1x8x8xbf16, #tpu.memory_space<vmem>>, vector<1x8x8xbf16>
    %10 = vector.shape_cast %9 : vector<1x8x8xbf16> to vector<8x8xbf16>
    %cst_10 = arith.constant dense<0.000000e+00> : vector<8x128xf32>
    %11 = tpu.matmul %10, %7, %cst_10 {dimension_numbers = #tpu.dot_dimension_numbers<[1], [0], [0], [1], [0, 0, 1, 1], [], []>} : vector<8x8xbf16>, vector<8x128xbf16>, vector<8x128xf32> -> vector<8x128xf32>
    %12 = arith.addf %8, %11 : vector<8x128xf32>
    %c0_11 = arith.constant 0 : index
    %c0_12 = arith.constant 0 : index
    %13 = vector.load %arg6[%c0_11, %c0_12] : memref<8x128xf32, #tpu.memory_space<vmem>>, vector<8x128xf32>
    tpu.vector_store %arg6[%c0_11, %c0_12], %12 {strides = array<i32>} : memref<8x128xf32, #tpu.memory_space<vmem>>, vector<8x128xf32>,
    %c2_i32 = arith.constant 2 : i32
    %14 = arith.cmpi eq, %arg1, %c2_i32 : i32
    %15 = arith.extui %14 : i1 to i32
    %c0_i32_13 = arith.constant 0 : i32
    %16 = arith.cmpi ne, %15, %c0_i32_13 : i32
    scf.if %16 {
      %c0_14 = arith.constant 0 : index
      %c0_15 = arith.constant 0 : index
      %17 = vector.load %arg6[%c0_14, %c0_15] : memref<8x128xf32, #tpu.memory_space<vmem>>, vector<8x128xf32>
      %c0_16 = arith.constant 0 : index
      %c0_17 = arith.constant 0 : index
      %18 = vector.load %arg5[%c0_16, %c0_17] : memref<1x128xf32, #tpu.memory_space<vmem>>, vector<1x128xf32>
      %19 = vector.broadcast %18 : vector<1x128xf32> to vector<8x128xf32>
      %20 = arith.addf %17, %19 : vector<8x128xf32>
      %c0_18 = arith.constant 0 : index
      %c0_19 = arith.constant 0 : index
      %21 = vector.load %arg6[%c0_18, %c0_19] : memref<8x128xf32, #tpu.memory_space<vmem>>, vector<8x128xf32>
      tpu.vector_store %arg6[%c0_18, %c0_19], %20 {strides = array<i32>} : memref<8x128xf32, #tpu.memory_space<vmem>>, vector<8x128xf32>,
    } else {
    }
    return
  }
  func.func @transform_0(%arg0: i32, %arg1: i32) -> (i32, i32) {
    %c0_i32 = arith.constant 0 : i32
    %c0_i32_0 = arith.constant 0 : i32
    %c0_i32_1 = arith.constant 0 : i32
    return %c0_i32, %c0_i32_0 : i32, i32
  }
  func.func @transform_1(%arg0: i32, %arg1: i32) -> (i32, i32, i32) {
    %c0_i32 = arith.constant 0 : i32
    %c0_i32_0 = arith.constant 0 : i32
    %c0_i32_1 = arith.constant 0 : i32
    return %arg1, %c0_i32, %c0_i32_0 : i32, i32, i32
  }
  func.func @transform_2(%arg0: i32, %arg1: i32) -> (i32, i32, i32) {
    %c0_i32 = arith.constant 0 : i32
    %c0_i32_0 = arith.constant 0 : i32
    return %arg1, %arg0, %c0_i32 : i32, i32, i32
  }
  func.func @transform_3(%arg0: i32, %arg1: i32) -> (i32, i32) {
    %c0_i32 = arith.constant 0 : i32
    %c0_i32_0 = arith.constant 0 : i32
    %c0_i32_1 = arith.constant 0 : i32
    return %c0_i32, %c0_i32_0 : i32, i32
  }
  func.func @transform_4(%arg0: i32, %arg1: i32) -> (i32, i32) {
    %c0_i32 = arith.constant 0 : i32
    %c0_i32_0 = arith.constant 0 : i32
    return %arg0, %c0_i32 : i32, i32
  }
}

</mosaic_0001>

<bundles_post_ra>
// kernel: tpu_custom_call.1
= control target key start
LH: loop header
LB: loop body
LE: loop exit
PB: predicated region body
PF: predicated region fallthrough
CT: control target
= control target key end

     0   :  { %9 = vsyncpa [#allocation3], 0  ;;  %s901_s0 = inlined_call_operand.hbm [shape: bf16[8,16], index: 0, kind: input, shape index: {}]   ;;  %s902_s1 = inlined_call_operand.hbm [shape: bf16[3,16,128], index: 1, kind: input, shape index: {}]   ;;  %s903_s2 = inlined_call_operand.hbm [shape: bf16[3,8,8], index: 2, kind: input, shape index: {}]   ;;  %s904_s3 = inlined_call_operand.vmem [shape: f32[1,128], index: 3, kind: input, shape index: {}]   ;;  %s905_s4 = inlined_call_operand.hbm [shape: f32[8,128], index: 4, kind: output, shape index: {}]  }
   0x1   :  { %10 = vsyncpa [#allocation6], 0 }
   0x2   :  { %12 = vsyncpa [#allocation6 + $0x1], 0 }
   0x3   :  { %13 = vsyncpa [#allocation4], 0  ;;  %s768_s15 = smov 0   ;;  %s770_s16 = smov 0  }
   0x4   :  { %s772_s17 = smov 0   ;;  %s774_s18 = smov 0  }
   0x5   :  { %s776_s19 = smov 0   ;;  %s778_s20 = smov 0  }
   0x6 LB: > { %s28_s21 = sadd.s32 1, %s732_s19  ;;  %s59_s22 = sadd.s32 1, %s724_s17  ;;  %s736_s20 = sphi %s778_s20, %s19_s20   ;;  %s732_s19 = sphi %s776_s19, %s914_s19   ;;  %s728_s18 = sphi %s774_s18, %s913_s18   ;;  %s724_s17 = sphi %s772_s17, %s912_s17   ;;  %s720_s16 = sphi %s770_s16, %s911_s16   ;;  %s716_s15 = sphi %s768_s15, %s910_s15  }
   0x7   : > { %p29_p0 = scmp.ge.s32.totalorder %s28_s21, 3  ;;  %p66_p1 = scmp.ne.s32.totalorder %s724_s17, %s720_s16 }
   0x8   : > { %p67_p2 = scmp.eq.s32.totalorder %s736_s20, 0  ;;  %p502_p4 = scmp.lt.s32.totalorder %s736_s20, 3 }
   0x9   : > { %s916_s21 = smov (%p29_p0, %s28_s21), 0  ;;  %s186_s25 = sand.u32 1, %s736_s20  }
   0xa   : > { %p805_p3 = por %p67_p2, %p66_p1  ;;  %s56_s24 = ssub.s32 %s732_s19, %s916_s21 }
   0xb   : > { %p57_p5 = scmp.eq.s32.totalorder %s56_s24, 0  ;;  %s188_s26 = sand.u32 1, %s724_s17  }
   0xc   : > { %s476_s27 = sshll.u32 %s732_s19, 3  ;;  %s455_s29 = sshll.u32 %s188_s26, 3 }
   0xd   : > { %s816_s28 = scalar_select %p57_p5, %s724_s17, %s59_s22  }
   0xe   : > { %s195_s6 = scalar_lea.hbm %s902_s1, %s476_s27  ;;  %s190_s8 = scalar_lea.vmem [#allocation5], %s455_s29 }
   0xf   : > { %s196_s7 = sshll.u32 %s195_s6, 4  ;;  %s198_s9 = sshll.u32 %s190_s8, 4  ;;  %s197_s7 = int_to_ptr.hbm [resolvable:$true] %s196_s7  ;;  %s199_s9 = int_to_ptr.vmem [resolvable:$true] %s198_s9 }
  0x10   : > { %p825_p6 = pnand %p502_p4, %p805_p3  ;;  %s187_s11 = scalar_lea.sflag [#allocation6], %s186_s25 }
  0x11   : > { %s738_s12 = smov 64   ;;  %s739_s13 = smov 4  }
  0x12   : > { %497 = dma.hbm_to_vmem [thread:$0]  (!%p825_p6), %s197_s7, 128, %s199_s9, %s187_s11, %s738_s12, %s738_s12, %s739_s13  }
  0x13   : > { %s832_s14 = sadd.s32 4294967295, %s736_s20   ;;  %p72_p7 = scmp.ne.s32.totalorder %s720_s16, %s716_s15 }
  0x14   : > { %p73_p8 = scmp.eq.s32.totalorder %s832_s14, 0  ;;  %p452_p9 = scmp.ge.s32.totalorder %s736_s20, 1 }
  0x15   : > { %p158_p10 = scmp.lt.s32.totalorder %s736_s20, 4  ;;  %s170_s27 = sshll.u32 %s901_s0, 4  ;;  %s171_s27 = int_to_ptr.hbm [resolvable:$true] %s170_s27 }
  0x16   : > { %p841_p11 = por %p73_p8, %p72_p7  ;;  %s740_s15 = smov [#allocation2]  }
  0x17   : > { %p845_p12 = pnand %p452_p9, %p158_p10  ;;  %s172_s29 = sshll.u32 %s740_s15, 4  ;;  %s173_s29 = int_to_ptr.vmem [resolvable:$true] %s172_s29 }
  0x18   : > { %s458_s30 = sshll.u32 %s188_s26, 2  ;;  %s459_s5 = sshll.u32 %s732_s19, 2 }
  0x19   : > { %p490_p13 = pneg %p845_p12  ;;  %s212_s6 = scalar_lea.vmem [#allocation7], %s458_s30 }
  0x1a   : > { %s221_s7 = sshll.u32 %s212_s6, 4  ;;  %s217_s12 = scalar_lea.hbm %s903_s2, %s459_s5  ;;  %s222_s7 = int_to_ptr.vmem [resolvable:$true] %s221_s7 }
  0x1b   : > { %p491_p0 = pnand %p490_p13, %p73_p8  ;;  %s219_s13 = sshll.u32 %s217_s12, 4  ;;  %s220_s13 = int_to_ptr.hbm [resolvable:$true] %s219_s13 }
  0x1c   : > { %500 = dma.hbm_to_vmem [thread:$0]  (!%p825_p6), %s220_s13, 64, %s222_s7, %s187_s11  }
  0x1d   : > { %493 = dma.hbm_to_vmem [thread:$0]  (!%p491_p0), %s171_s27, 64, %s173_s29, [#allocation3]  }
  0x1e   : > { %230 = sbr.rel (%p845_p12) target bundleno = 330 (0x14a), region = 36 }
  0x23   : > { %703 = dma.done.wait (%p73_p8), [#allocation3], 64  }
  0x24   : > { %705 = vsyncadd (%p73_p8), [#allocation3], 4294967232  ;;  %s237_s26 = sand.u32 1, %s832_s14   ;;  %s239_s24 = sand.u32 1, %s720_s16  }
  0x25   : > { %s462_s25 = sshll.u32 %s239_s24, 3  ;;  %s238_s27 = scalar_lea.sflag [#allocation6], %s237_s26 }
  0x26   : > { %s241_s15 = scalar_lea.vmem [#allocation5], %s462_s25 }
  0x27   : > { %707 = dma.done.wait (%p841_p11), %s238_s27, 192  }
  0x28   : > { %709 = vsyncadd (%p841_p11), %s238_s27, 4294967104  ;;  %s463_s10 = sshll.u32 %s239_s24, 2  ;;  %p464_p1 = scmp.ne.s32.totalorder %s728_s18, 0 }
  0x29   : > { %s251_s11 = scalar_lea.vmem [#allocation7], %s463_s10 }
  0x2a   : > { %281 = sbr.rel (%p464_p1) target bundleno = 49 (0x31), region = 52 }
  0x2f   : > { %v741_v0 = vmov 0.0  }
  0x30   : > { %282 = vst [vmem:[#allocation8] sm:$0xff] %v741_v0 }
  0x31 PF: > { %v477_v1 = vld [vmem:[%s241_s15] sm:$0xff]  ;;  %v283_v2 = vld [vmem:[#allocation2] sm:$0xf]  ;;  %vm292_vm0 = vcmask 130048   ;;  %vm316_vm1 = vcmask 1043456   ;;  %vm312_vm2 = vcmask 64512  }
  0x32   : > { %303 = vmatpush.bf16.msra.mxu0 %v477_v1  ;;  %v311_v6 = vld [vmem:[%s251_s11] sm:$0xf]  ;;  %p471_p2 = scmp.ne.s32.totalorder %s728_s18, 2 }
  0x35   : > { %469 = vmatmul.msk.bf16.vlgmr.msra.gmra.mxu0 %vm292_vm0, %v283_v2 }
  0x37   : > { %v310_v8 = vld [vmem:[#allocation8] sm:$0xff] }
  0xb2   : > { %v305_v3 = vpop.f32.mrf.mxu0 }
  0xb3   : > { %v309_v4 = vpack.c.bf16 %v305_v3, %v305_v3 }
  0xb5   : > { %v318_v5 = vsel %vm316_vm1, %v309_v4, 0 }
  0xb6   : > { %327 = vmatpush.bf16.msra.mxu1 %v318_v5 }
  0xb9   : > { %470 = vmatmul.msk.bf16.vlgmr.msra.gmra.mxu1 %vm312_vm2, %v311_v6 }
  0xba   : > { %v307_v7 = vpop.f32.mrf.mxu0 }
 0x136   : > { %v329_v9 = vpop.f32.mrf.mxu1 }
 0x137   : > { %v333_v10 = vadd.f32 %v329_v9, %v310_v8 }
 0x139   : > { %334 = vst [vmem:[#allocation8] sm:$0xff] %v333_v10 }
 0x13a   : > { %338 = sbr.rel (%p471_p2) target bundleno = 324 (0x144), region = 56 }
 0x13e   : > { %v331_v11 = vpop.f32.mrf.mxu1 }
 0x13f   : > { %v559_v13 = vld [vmem:[%s904_s3] ss:$0 sm:$0xff] }
 0x140   : > { %v339_v12 = vld [vmem:[#allocation8] sm:$0xff] }
 0x141   : > { %v344_v14 = vadd.f32 %v559_v13, %v339_v12 }
 0x143   : > { %345 = vst [vmem:[#allocation8] sm:$0xff] %v344_v14 }
 0x144 PF: > { %p504_p3 = scmp.eq.s32.totalorder %s832_s14, 2  ;;  %s356_s5 = sshll.u32 %s905_s4, 4  ;;  %s357_s5 = int_to_ptr.hbm [resolvable:$true] %s356_s5 }
 0x145   : > { %s742_s6 = smov [#allocation8]  }
 0x146   : > { %s354_s7 = sshll.u32 %s742_s6, 4  ;;  %s355_s7 = int_to_ptr.vmem [resolvable:$true] %s354_s7 }
 0x147   : > { %487 = dma.vmem_to_hbm [thread:$0]  (%p504_p3), %s355_s7, 128, %s357_s5, [#allocation4]  }
 0x148   : > { %711 = dma.done.wait (%p504_p3), [#allocation4], 128  }
 0x149   : > { %713 = vsyncadd (%p504_p3), [#allocation4], 4294967168 }
 0x14a PF: > { %s19_s20 = sadd.s32 1, %s736_s20   ;;  %s910_s15 = smov %s720_s16 }
 0x14b   : > { %p16_p4 = scmp.ge.s32.totalorder %s19_s20, 5   ;;  %s911_s16 = smov %s724_s17 }
 0x14c   : > { %s912_s17 = smov %s816_s28  ;;  %s913_s18 = smov %s732_s19 }
 0x14d   : > { %s914_s19 = smov %s916_s21  ;;  %18 = sbr.rel (!%p16_p4) target bundleno = 6 (0x6), region = 98 }
 0x152   :  { %370 = vsyncpa [#allocation3], 1 }
 0x153   :  { %372 = vsyncpa [#allocation3 + $0x1], 1 }
 0x154   :  { %373 = vsyncpa [#allocation6], 1 }
 0x155   :  { %375 = vsyncpa [#allocation6 + $0x1], 1 }
 0x156   :  { %376 = vsyncpa [#allocation4], 1 }
 0x157   :  { %378 = vsyncpa [#allocation4 + $0x1], 1 }

</bundles_post_ra>
